<compile_context>
chip_gen: v6e
topology: v6e:2x2x1
jax: 0.10.0
libtpu: 0.0.40
codegen_flags: <defaults>
</compile_context>

<pallas_src>
import jax
import jax.numpy as jnp
from jax.experimental import pallas as pl
from jax.experimental.pallas import tpu as pltpu


def _round_up(x, m):
    return (x + m - 1) // m * m


# Rows (of 128 lanes) processed per inner step of the VPU kernel; bounds the
# live vreg set (accumulators + current channel slabs) so nothing spills.
_ROW_CHUNK = 32


# ---------------------------------------------------------------------------
# Kernels
# ---------------------------------------------------------------------------

def _attention_kernel_vpu(e_ref, d_ref, wes_ref, wp_ref, wo_ref, bsum_ref,
                          bo_ref, o_ref):
    """Small-C path.  e_ref/d_ref/o_ref: (C, rows, 128) VMEM tiles.
    wes (half, C), wp (half, C), wo (C, half), bsum (half,), bo (C,) in SMEM.

    The 1x1x1 convs are unrolled scalar-broadcast multiply-accumulates on full
    (chunk_rows, 128) slabs -> dense vregs even for C < 8, no MXU involvement.
    """
    C = e_ref.shape[0]
    half = wes_ref.shape[0]
    rows, lanes = e_ref.shape[1], e_ref.shape[2]

    for r0 in range(0, rows, _ROW_CHUNK):
        rs = min(_ROW_CHUNK, rows - r0)

        # Stage 1: pre = (wt+ws) @ e + wp @ d + (bt+bp+bs); ReLU.
        accs = [jnp.full((rs, lanes), bsum_ref[h], jnp.float32)
                for h in range(half)]
        for c in range(C):
            ec = e_ref[c, r0:r0 + rs, :].astype(jnp.float32)
            dc = d_ref[c, r0:r0 + rs, :].astype(jnp.float32)
            for h in range(half):
                accs[h] = accs[h] + wes_ref[h, c] * ec + wp_ref[h, c] * dc
        attn = [jnp.maximum(a, 0.0) for a in accs]

        # Stage 2: gate = sigmoid(wo @ attn + bo); o = e * gate + d.
        for c in range(C):
            out = jnp.full((rs, lanes), bo_ref[c], jnp.float32)
            for h in range(half):
                out = out + wo_ref[c, h] * attn[h]
            gate = jax.nn.sigmoid(out)
            ec = e_ref[c, r0:r0 + rs, :].astype(jnp.float32)
            dc = d_ref[c, r0:r0 + rs, :].astype(jnp.float32)
            o_ref[c, r0:r0 + rs, :] = (ec * gate + dc).astype(o_ref.dtype)


def _attention_kernel_mxu(e_ref, d_ref, wes_ref, wp_ref, wo_ref, bsum_ref,
                          bo_ref, o_ref):
    """Large-C / ragged-SP fallback: channel contractions on the MXU.

    e_ref / d_ref / o_ref : (C, T) tiles (lane dim = T, multiple of 128 or full).
    """
    e = e_ref[...].astype(jnp.float32)
    d = d_ref[...].astype(jnp.float32)

    pre = (jnp.dot(wes_ref[...], e, preferred_element_type=jnp.float32)
           + jnp.dot(wp_ref[...], d, preferred_element_type=jnp.float32)
           + bsum_ref[...])                                   # (half, T)
    attn = jnp.maximum(pre, 0.0)

    out = jnp.dot(wo_ref[...], attn,
                  preferred_element_type=jnp.float32) + bo_ref[...]   # (C, T)
    gate = jax.nn.sigmoid(out)

    o_ref[...] = (e * gate + d).astype(o_ref.dtype)


# ---------------------------------------------------------------------------
# Wrapper
# ---------------------------------------------------------------------------

def _choose_tile_lanes(C, SP, N, itemsize, target_bytes, act_budget):
    """Spatial tile width (lanes).  Big enough that each of the 3 activation
    streams moves ~target_bytes per step, small enough for the VMEM budget and
    (when N == 1) small enough that both v7x TensorCores get >=1 step each."""
    max_from_vmem = max(act_budget // (3 * 2 * C * itemsize), 128)
    tile = max(target_bytes // (C * itemsize), 128)
    tile = min(tile, max_from_vmem)
    if N == 1 and SP > 256:
        tile = min(tile, _round_up(pl.cdiv(SP, 2), 128))
    if tile >= SP:
        return SP                      # single block == full dim, always legal
    return max(128, (tile // 128) * 128)


def attention_block_pallas(encoder_x, decoder_x, params, *,
                           target_bytes_per_stream=2 << 20,
                           act_vmem_budget=32 << 20,
                           mxu_channel_threshold=32):
    """encoder_x, decoder_x: (N, C, D, H, W) float32 (PyTorch NCDHW layout)."""
    N, C, D, H, W = encoder_x.shape
    assert decoder_x.shape == encoder_x.shape, (
        "psi(encoder_x) and the gated residual require matching enc/dec shapes")
    half = C // 2
    SP = D * H * W
    itemsize = jnp.dtype(encoder_x.dtype).itemsize

    (wt, bt), (wp, bp), (ws, bs), (wo, bo) = params
    # Fold: theta(e) + psi(e) contract e with (wt + ws); sum all three biases.
    wes = wt + ws                                   # (half, C)
    bsum = bt + bp + bs                             # (half,)

    tile = _choose_tile_lanes(C, SP, N, itemsize,
                              target_bytes_per_stream, act_vmem_budget)

    # Accurate VMEM request: 3 double-buffered activation streams + weights
    # (+2 MiB headroom); floored at 32 MiB, kept safely below v7x's 64 MiB.
    act_bytes = 3 * 2 * C * tile * itemsize
    w_bytes = 2 * 4 * (2 * half * C + C * half + half + C)
    vmem_limit = int(min(max(act_bytes + w_bytes + (2 << 20), 32 << 20),
                         56 << 20))

    cparams = pltpu.CompilerParams(
        dimension_semantics=("parallel", "parallel"),
        vmem_limit_bytes=vmem_limit)

    use_vpu = (C < mxu_channel_threshold) and (SP % 128 == 0)

    if use_vpu:
        # Channels-first, spatial viewed as (rows, 128): pure reshape, no
        # transpose, full-vreg slabs per channel.
        R = SP // 128
        r_tile = tile // 128
        if r_tile >= R or R <= 8:
            r_tile = R
        else:
            r_tile = max(8, (r_tile // 8) * 8)

        e4 = encoder_x.reshape(N, C, R, 128)
        d4 = decoder_x.reshape(N, C, R, 128)
        grid = (N, pl.cdiv(R, r_tile))

        act_spec = pl.BlockSpec((None, C, r_tile, 128),
                                lambda n, s: (n, 0, s, 0))
        smem = pl.BlockSpec(memory_space=pltpu.MemorySpace.SMEM)

        out4 = pl.pallas_call(
            _attention_kernel_vpu,
            out_shape=jax.ShapeDtypeStruct((N, C, R, 128), encoder_x.dtype),
            grid_spec=pltpu.PrefetchScalarGridSpec(
                num_scalar_prefetch=0,
                grid=grid,
                in_specs=[act_spec, act_spec, smem, smem, smem, smem, smem],
                out_specs=act_spec),
            compiler_params=cparams,
        )(e4, d4, wes, wp, wo, bsum, bo)
        return out4.reshape(N, C, D, H, W)

    # MXU fallback (large C, or SP not a multiple of 128).  No wrapper-side
    # padding: a ragged last spatial tile is clipped by the Pallas pipeline
    # (OOB lanes never written back; garbage lanes stay in their own lanes
    # because the contraction is over channels only).
    e3 = encoder_x.reshape(N, C, SP)
    d3 = decoder_x.reshape(N, C, SP)
    grid = (N, pl.cdiv(SP, tile))

    act_spec = pl.BlockSpec((None, C, tile), lambda n, s: (n, 0, s))

    def full_spec(shape):
        return pl.BlockSpec(shape, lambda n, s: (0,) * len(shape))

    out3 = pl.pallas_call(
        _attention_kernel_mxu,
        out_shape=jax.ShapeDtypeStruct((N, C, SP), encoder_x.dtype),
        grid_spec=pltpu.PrefetchScalarGridSpec(
            num_scalar_prefetch=0,
            grid=grid,
            in_specs=[
                act_spec,                  # encoder tile (C, tile)
                act_spec,                  # decoder tile (C, tile)
                full_spec((half, C)),      # wt + ws
                full_spec((half, C)),      # wp
                full_spec((C, half)),      # wo
                full_spec((half, 1)),      # bt + bp + bs
                full_spec((C, 1)),         # bo
            ],
            out_specs=act_spec),
        compiler_params=cparams,
    )(e3, d3, wes, wp, wo, bsum.reshape(half, 1), bo.reshape(C, 1))
    return out3.reshape(N, C, D, H, W)


# ---------------------------------------------------------------------------
# Params + pure-JAX reference
# ---------------------------------------------------------------------------

def init_params(key, encoder_channels, decoder_channels):
    """Weights stored channels-first as (out_ch, in_ch), i.e. exactly
    PyTorch's Conv3d weight[:, :, 0, 0, 0]."""
    C, Cd = encoder_channels, decoder_channels
    half = C // 2
    ks = jax.random.split(key, 8)
    scale = 0.1
    wt = scale * jax.random.normal(ks[0], (half, C), jnp.float32)
    bt = scale * jax.random.normal(ks[1], (half,), jnp.float32)
    wp = scale * jax.random.normal(ks[2], (half, Cd), jnp.float32)
    bp = scale * jax.random.normal(ks[3], (half,), jnp.float32)
    ws = scale * jax.random.normal(ks[4], (half, Cd), jnp.float32)
    bs = scale * jax.random.normal(ks[5], (half,), jnp.float32)
    wo = scale * jax.random.normal(ks[6], (C, half), jnp.float32)
    bo = scale * jax.random.normal(ks[7], (C,), jnp.float32)
    return (wt, bt), (wp, bp), (ws, bs), (wo, bo)


def attention_block_ref(encoder_x, decoder_x, params):
    """Pure-JAX reference mirroring the PyTorch forward (pointwise convs),
    kept un-folded to independently check the wt+ws fold."""
    (wt, bt), (wp, bp), (ws, bs), (wo, bo) = params
    N, C, D, H, W = encoder_x.shape
    e = encoder_x.reshape(N, C, -1)
    d = decoder_x.reshape(N, C, -1)
    theta = jnp.einsum('oc,ncs->nos', wt, e) + bt[None, :, None]
    phi = jnp.einsum('oc,ncs->nos', wp, d) + bp[None, :, None]
    psi = jnp.einsum('oc,ncs->nos', ws, e) + bs[None, :, None]
    attn = jax.nn.relu(theta + phi + psi)
    gate = jax.nn.sigmoid(jnp.einsum('oc,ncs->nos', wo, attn) + bo[None, :, None])
    out = e * gate + d
    return out.reshape(encoder_x.shape)


if __name__ == "__main__":
    def _check(N, C, D, H, W, key):
        k_e, k_d, k_p = jax.random.split(key, 3)
        enc = jax.random.normal(k_e, (N, C, D, H, W), jnp.float32)
        dec = jax.random.normal(k_d, (N, C, D, H, W), jnp.float32)
        params = init_params(k_p, C, C)
        out = attention_block_pallas(enc, dec, params)
        out = jax.block_until_ready(out)
        ref = attention_block_ref(enc, dec, params)
        assert out.shape == enc.shape
        assert jnp.allclose(out, ref, atol=1e-4, rtol=1e-4), (
            f"mismatch vs reference for shape {(N, C, D, H, W)}")

    key = jax.random.PRNGKey(0)
    k1, k2, k3, k4 = jax.random.split(key, 4)
    # VPU path, single lane-dense spatial block per batch element.
    _check(2, 4, 8, 16, 16, k1)
    # MXU fallback path: SP=300 not a multiple of 128 -> ragged last tile.
    _check(1, 16, 3, 10, 10, k2)
    # VPU path with multiple spatial steps and a ragged last row-block.
    _check(1, 4, 8, 16, 40, k3)
    # MXU path with larger channel count and N==1 spatial split (2 steps).
    _check(1, 64, 8, 16, 16, k4)

    print("KERNEL_OK")
</pallas_src>

<mosaic_0001>
module attributes {stable_mosaic.version = 11 : i64} {
  func.func @_attention_kernel_vpu(%arg0: i32, %arg1: i32, %arg2: memref<1x4x16x128xf32, #tpu.memory_space<vmem>>, %arg3: memref<1x4x16x128xf32, #tpu.memory_space<vmem>>, %arg4: memref<2x4xf32, #tpu.memory_space<smem>>, %arg5: memref<2x4xf32, #tpu.memory_space<smem>>, %arg6: memref<4x2xf32, #tpu.memory_space<smem>>, %arg7: memref<2xf32, #tpu.memory_space<smem>>, %arg8: memref<4xf32, #tpu.memory_space<smem>>, %arg9: memref<1x4x16x128xf32, #tpu.memory_space<vmem>>) attributes {dimension_semantics = [#tpu.dimension_semantics<parallel>, #tpu.dimension_semantics<parallel>], iteration_bounds = array<i64: 2, 1>, scalar_prefetch = 0 : i64, scratch_operands = 0 : i64, tpu.core_type = #tpu.core_type<tc>, window_params = [{transform_indices = @transform_0, window_bounds = array<i64: 1, 4, 16, 128>}, {transform_indices = @transform_1, window_bounds = array<i64: 1, 4, 16, 128>}, {transform_indices = @transform_2, window_bounds = array<i64: 2, 4>}, {transform_indices = @transform_3, window_bounds = array<i64: 2, 4>}, {transform_indices = @transform_4, window_bounds = array<i64: 4, 2>}, {transform_indices = @transform_5, window_bounds = array<i64: 2>}, {transform_indices = @transform_6, window_bounds = array<i64: 4>}, {transform_indices = @transform_7, window_bounds = array<i64: 1, 4, 16, 128>}]} {
    %c0 = arith.constant 0 : index
    %0 = memref.load %arg7[%c0] : memref<2xf32, #tpu.memory_space<smem>>
    %1 = vector.broadcast %0 : f32 to vector<16x128xf32>
    %c1 = arith.constant 1 : index
    %2 = memref.load %arg7[%c1] : memref<2xf32, #tpu.memory_space<smem>>
    %3 = vector.broadcast %2 : f32 to vector<16x128xf32>
    %c0_0 = arith.constant 0 : index
    %c0_1 = arith.constant 0 : index
    %c0_2 = arith.constant 0 : index
    %c0_3 = arith.constant 0 : index
    %4 = vector.load %arg2[%c0_0, %c0_1, %c0_2, %c0_3] : memref<1x4x16x128xf32, #tpu.memory_space<vmem>>, vector<1x1x16x128xf32>
    %5 = vector.shape_cast %4 : vector<1x1x16x128xf32> to vector<16x128xf32>
    %c0_4 = arith.constant 0 : index
    %c0_5 = arith.constant 0 : index
    %c0_6 = arith.constant 0 : index
    %c0_7 = arith.constant 0 : index
    %6 = vector.load %arg3[%c0_4, %c0_5, %c0_6, %c0_7] : memref<1x4x16x128xf32, #tpu.memory_space<vmem>>, vector<1x1x16x128xf32>
    %7 = vector.shape_cast %6 : vector<1x1x16x128xf32> to vector<16x128xf32>
    %c0_8 = arith.constant 0 : index
    %c0_9 = arith.constant 0 : index
    %8 = memref.load %arg4[%c0_8, %c0_9] : memref<2x4xf32, #tpu.memory_space<smem>>
    %9 = vector.broadcast %8 : f32 to vector<16x128xf32>
    %10 = arith.mulf %9, %5 : vector<16x128xf32>
    %11 = arith.addf %1, %10 : vector<16x128xf32>
    %c0_10 = arith.constant 0 : index
    %c0_11 = arith.constant 0 : index
    %12 = memref.load %arg5[%c0_10, %c0_11] : memref<2x4xf32, #tpu.memory_space<smem>>
    %13 = vector.broadcast %12 : f32 to vector<16x128xf32>
    %14 = arith.mulf %13, %7 : vector<16x128xf32>
    %15 = arith.addf %11, %14 : vector<16x128xf32>
    %c1_12 = arith.constant 1 : index
    %c0_13 = arith.constant 0 : index
    %16 = memref.load %arg4[%c1_12, %c0_13] : memref<2x4xf32, #tpu.memory_space<smem>>
    %17 = vector.broadcast %16 : f32 to vector<16x128xf32>
    %18 = arith.mulf %17, %5 : vector<16x128xf32>
    %19 = arith.addf %3, %18 : vector<16x128xf32>
    %c1_14 = arith.constant 1 : index
    %c0_15 = arith.constant 0 : index
    %20 = memref.load %arg5[%c1_14, %c0_15] : memref<2x4xf32, #tpu.memory_space<smem>>
    %21 = vector.broadcast %20 : f32 to vector<16x128xf32>
    %22 = arith.mulf %21, %7 : vector<16x128xf32>
    %23 = arith.addf %19, %22 : vector<16x128xf32>
    %c0_16 = arith.constant 0 : index
    %c1_17 = arith.constant 1 : index
    %c0_18 = arith.constant 0 : index
    %c0_19 = arith.constant 0 : index
    %24 = vector.load %arg2[%c0_16, %c1_17, %c0_18, %c0_19] : memref<1x4x16x128xf32, #tpu.memory_space<vmem>>, vector<1x1x16x128xf32>
    %25 = vector.shape_cast %24 : vector<1x1x16x128xf32> to vector<16x128xf32>
    %c0_20 = arith.constant 0 : index
    %c1_21 = arith.constant 1 : index
    %c0_22 = arith.constant 0 : index
    %c0_23 = arith.constant 0 : index
    %26 = vector.load %arg3[%c0_20, %c1_21, %c0_22, %c0_23] : memref<1x4x16x128xf32, #tpu.memory_space<vmem>>, vector<1x1x16x128xf32>
    %27 = vector.shape_cast %26 : vector<1x1x16x128xf32> to vector<16x128xf32>
    %c0_24 = arith.constant 0 : index
    %c1_25 = arith.constant 1 : index
    %28 = memref.load %arg4[%c0_24, %c1_25] : memref<2x4xf32, #tpu.memory_space<smem>>
    %29 = vector.broadcast %28 : f32 to vector<16x128xf32>
    %30 = arith.mulf %29, %25 : vector<16x128xf32>
    %31 = arith.addf %15, %30 : vector<16x128xf32>
    %c0_26 = arith.constant 0 : index
    %c1_27 = arith.constant 1 : index
    %32 = memref.load %arg5[%c0_26, %c1_27] : memref<2x4xf32, #tpu.memory_space<smem>>
    %33 = vector.broadcast %32 : f32 to vector<16x128xf32>
    %34 = arith.mulf %33, %27 : vector<16x128xf32>
    %35 = arith.addf %31, %34 : vector<16x128xf32>
    %c1_28 = arith.constant 1 : index
    %c1_29 = arith.constant 1 : index
    %36 = memref.load %arg4[%c1_28, %c1_29] : memref<2x4xf32, #tpu.memory_space<smem>>
    %37 = vector.broadcast %36 : f32 to vector<16x128xf32>
    %38 = arith.mulf %37, %25 : vector<16x128xf32>
    %39 = arith.addf %23, %38 : vector<16x128xf32>
    %c1_30 = arith.constant 1 : index
    %c1_31 = arith.constant 1 : index
    %40 = memref.load %arg5[%c1_30, %c1_31] : memref<2x4xf32, #tpu.memory_space<smem>>
    %41 = vector.broadcast %40 : f32 to vector<16x128xf32>
    %42 = arith.mulf %41, %27 : vector<16x128xf32>
    %43 = arith.addf %39, %42 : vector<16x128xf32>
    %c0_32 = arith.constant 0 : index
    %c2 = arith.constant 2 : index
    %c0_33 = arith.constant 0 : index
    %c0_34 = arith.constant 0 : index
    %44 = vector.load %arg2[%c0_32, %c2, %c0_33, %c0_34] : memref<1x4x16x128xf32, #tpu.memory_space<vmem>>, vector<1x1x16x128xf32>
    %45 = vector.shape_cast %44 : vector<1x1x16x128xf32> to vector<16x128xf32>
    %c0_35 = arith.constant 0 : index
    %c2_36 = arith.constant 2 : index
    %c0_37 = arith.constant 0 : index
    %c0_38 = arith.constant 0 : index
    %46 = vector.load %arg3[%c0_35, %c2_36, %c0_37, %c0_38] : memref<1x4x16x128xf32, #tpu.memory_space<vmem>>, vector<1x1x16x128xf32>
    %47 = vector.shape_cast %46 : vector<1x1x16x128xf32> to vector<16x128xf32>
    %c0_39 = arith.constant 0 : index
    %c2_40 = arith.constant 2 : index
    %48 = memref.load %arg4[%c0_39, %c2_40] : memref<2x4xf32, #tpu.memory_space<smem>>
    %49 = vector.broadcast %48 : f32 to vector<16x128xf32>
    %50 = arith.mulf %49, %45 : vector<16x128xf32>
    %51 = arith.addf %35, %50 : vector<16x128xf32>
    %c0_41 = arith.constant 0 : index
    %c2_42 = arith.constant 2 : index
    %52 = memref.load %arg5[%c0_41, %c2_42] : memref<2x4xf32, #tpu.memory_space<smem>>
    %53 = vector.broadcast %52 : f32 to vector<16x128xf32>
    %54 = arith.mulf %53, %47 : vector<16x128xf32>
    %55 = arith.addf %51, %54 : vector<16x128xf32>
    %c1_43 = arith.constant 1 : index
    %c2_44 = arith.constant 2 : index
    %56 = memref.load %arg4[%c1_43, %c2_44] : memref<2x4xf32, #tpu.memory_space<smem>>
    %57 = vector.broadcast %56 : f32 to vector<16x128xf32>
    %58 = arith.mulf %57, %45 : vector<16x128xf32>
    %59 = arith.addf %43, %58 : vector<16x128xf32>
    %c1_45 = arith.constant 1 : index
    %c2_46 = arith.constant 2 : index
    %60 = memref.load %arg5[%c1_45, %c2_46] : memref<2x4xf32, #tpu.memory_space<smem>>
    %61 = vector.broadcast %60 : f32 to vector<16x128xf32>
    %62 = arith.mulf %61, %47 : vector<16x128xf32>
    %63 = arith.addf %59, %62 : vector<16x128xf32>
    %c0_47 = arith.constant 0 : index
    %c3 = arith.constant 3 : index
    %c0_48 = arith.constant 0 : index
    %c0_49 = arith.constant 0 : index
    %64 = vector.load %arg2[%c0_47, %c3, %c0_48, %c0_49] : memref<1x4x16x128xf32, #tpu.memory_space<vmem>>, vector<1x1x16x128xf32>
    %65 = vector.shape_cast %64 : vector<1x1x16x128xf32> to vector<16x128xf32>
    %c0_50 = arith.constant 0 : index
    %c3_51 = arith.constant 3 : index
    %c0_52 = arith.constant 0 : index
    %c0_53 = arith.constant 0 : index
    %66 = vector.load %arg3[%c0_50, %c3_51, %c0_52, %c0_53] : memref<1x4x16x128xf32, #tpu.memory_space<vmem>>, vector<1x1x16x128xf32>
    %67 = vector.shape_cast %66 : vector<1x1x16x128xf32> to vector<16x128xf32>
    %c0_54 = arith.constant 0 : index
    %c3_55 = arith.constant 3 : index
    %68 = memref.load %arg4[%c0_54, %c3_55] : memref<2x4xf32, #tpu.memory_space<smem>>
    %69 = vector.broadcast %68 : f32 to vector<16x128xf32>
    %70 = arith.mulf %69, %65 : vector<16x128xf32>
    %71 = arith.addf %55, %70 : vector<16x128xf32>
    %c0_56 = arith.constant 0 : index
    %c3_57 = arith.constant 3 : index
    %72 = memref.load %arg5[%c0_56, %c3_57] : memref<2x4xf32, #tpu.memory_space<smem>>
    %73 = vector.broadcast %72 : f32 to vector<16x128xf32>
    %74 = arith.mulf %73, %67 : vector<16x128xf32>
    %75 = arith.addf %71, %74 : vector<16x128xf32>
    %c1_58 = arith.constant 1 : index
    %c3_59 = arith.constant 3 : index
    %76 = memref.load %arg4[%c1_58, %c3_59] : memref<2x4xf32, #tpu.memory_space<smem>>
    %77 = vector.broadcast %76 : f32 to vector<16x128xf32>
    %78 = arith.mulf %77, %65 : vector<16x128xf32>
    %79 = arith.addf %63, %78 : vector<16x128xf32>
    %c1_60 = arith.constant 1 : index
    %c3_61 = arith.constant 3 : index
    %80 = memref.load %arg5[%c1_60, %c3_61] : memref<2x4xf32, #tpu.memory_space<smem>>
    %81 = vector.broadcast %80 : f32 to vector<16x128xf32>
    %82 = arith.mulf %81, %67 : vector<16x128xf32>
    %83 = arith.addf %79, %82 : vector<16x128xf32>
    %cst = arith.constant 0.000000e+00 : f32
    %84 = vector.broadcast %cst : f32 to vector<16x128xf32>
    %85 = arith.maximumf %75, %84 : vector<16x128xf32>
    %cst_62 = arith.constant 0.000000e+00 : f32
    %86 = vector.broadcast %cst_62 : f32 to vector<16x128xf32>
    %87 = arith.maximumf %83, %86 : vector<16x128xf32>
    %c0_63 = arith.constant 0 : index
    %88 = memref.load %arg8[%c0_63] : memref<4xf32, #tpu.memory_space<smem>>
    %89 = vector.broadcast %88 : f32 to vector<16x128xf32>
    %c0_64 = arith.constant 0 : index
    %c0_65 = arith.constant 0 : index
    %90 = memref.load %arg6[%c0_64, %c0_65] : memref<4x2xf32, #tpu.memory_space<smem>>
    %91 = vector.broadcast %90 : f32 to vector<16x128xf32>
    %92 = arith.mulf %91, %85 : vector<16x128xf32>
    %93 = arith.addf %89, %92 : vector<16x128xf32>
    %c0_66 = arith.constant 0 : index
    %c1_67 = arith.constant 1 : index
    %94 = memref.load %arg6[%c0_66, %c1_67] : memref<4x2xf32, #tpu.memory_space<smem>>
    %95 = vector.broadcast %94 : f32 to vector<16x128xf32>
    %96 = arith.mulf %95, %87 : vector<16x128xf32>
    %97 = arith.addf %93, %96 : vector<16x128xf32>
    %98 = arith.negf %97 : vector<16x128xf32>
    %99 = math.exp %98 : vector<16x128xf32>
    %cst_68 = arith.constant 1.000000e+00 : f32
    %100 = vector.broadcast %cst_68 : f32 to vector<16x128xf32>
    %101 = arith.addf %100, %99 : vector<16x128xf32>
    %102 = arith.divf %100, %101 : vector<16x128xf32>
    %c0_69 = arith.constant 0 : index
    %c0_70 = arith.constant 0 : index
    %c0_71 = arith.constant 0 : index
    %c0_72 = arith.constant 0 : index
    %103 = vector.load %arg2[%c0_69, %c0_70, %c0_71, %c0_72] : memref<1x4x16x128xf32, #tpu.memory_space<vmem>>, vector<1x1x16x128xf32>
    %104 = vector.shape_cast %103 : vector<1x1x16x128xf32> to vector<16x128xf32>
    %c0_73 = arith.constant 0 : index
    %c0_74 = arith.constant 0 : index
    %c0_75 = arith.constant 0 : index
    %c0_76 = arith.constant 0 : index
    %105 = vector.load %arg3[%c0_73, %c0_74, %c0_75, %c0_76] : memref<1x4x16x128xf32, #tpu.memory_space<vmem>>, vector<1x1x16x128xf32>
    %106 = vector.shape_cast %105 : vector<1x1x16x128xf32> to vector<16x128xf32>
    %107 = arith.mulf %104, %102 : vector<16x128xf32>
    %108 = arith.addf %107, %106 : vector<16x128xf32>
    %c0_77 = arith.constant 0 : index
    %c0_78 = arith.constant 0 : index
    %c0_79 = arith.constant 0 : index
    %c0_80 = arith.constant 0 : index
    %109 = vector.load %arg9[%c0_77, %c0_78, %c0_79, %c0_80] : memref<1x4x16x128xf32, #tpu.memory_space<vmem>>, vector<1x1x16x128xf32>
    %110 = vector.shape_cast %109 : vector<1x1x16x128xf32> to vector<16x128xf32>
    %111 = vector.shape_cast %108 : vector<16x128xf32> to vector<1x1x16x128xf32>
    tpu.vector_store %arg9[%c0_77, %c0_78, %c0_79, %c0_80], %111 {strides = array<i32>} : memref<1x4x16x128xf32, #tpu.memory_space<vmem>>, vector<1x1x16x128xf32>,
    %c1_81 = arith.constant 1 : index
    %112 = memref.load %arg8[%c1_81] : memref<4xf32, #tpu.memory_space<smem>>
    %113 = vector.broadcast %112 : f32 to vector<16x128xf32>
    %c1_82 = arith.constant 1 : index
    %c0_83 = arith.constant 0 : index
    %114 = memref.load %arg6[%c1_82, %c0_83] : memref<4x2xf32, #tpu.memory_space<smem>>
    %115 = vector.broadcast %114 : f32 to vector<16x128xf32>
    %116 = arith.mulf %115, %85 : vector<16x128xf32>
    %117 = arith.addf %113, %116 : vector<16x128xf32>
    %c1_84 = arith.constant 1 : index
    %c1_85 = arith.constant 1 : index
    %118 = memref.load %arg6[%c1_84, %c1_85] : memref<4x2xf32, #tpu.memory_space<smem>>
    %119 = vector.broadcast %118 : f32 to vector<16x128xf32>
    %120 = arith.mulf %119, %87 : vector<16x128xf32>
    %121 = arith.addf %117, %120 : vector<16x128xf32>
    %122 = arith.negf %121 : vector<16x128xf32>
    %123 = math.exp %122 : vector<16x128xf32>
    %cst_86 = arith.constant 1.000000e+00 : f32
    %124 = vector.broadcast %cst_86 : f32 to vector<16x128xf32>
    %125 = arith.addf %124, %123 : vector<16x128xf32>
    %126 = arith.divf %124, %125 : vector<16x128xf32>
    %c0_87 = arith.constant 0 : index
    %c1_88 = arith.constant 1 : index
    %c0_89 = arith.constant 0 : index
    %c0_90 = arith.constant 0 : index
    %127 = vector.load %arg2[%c0_87, %c1_88, %c0_89, %c0_90] : memref<1x4x16x128xf32, #tpu.memory_space<vmem>>, vector<1x1x16x128xf32>
    %128 = vector.shape_cast %127 : vector<1x1x16x128xf32> to vector<16x128xf32>
    %c0_91 = arith.constant 0 : index
    %c1_92 = arith.constant 1 : index
    %c0_93 = arith.constant 0 : index
    %c0_94 = arith.constant 0 : index
    %129 = vector.load %arg3[%c0_91, %c1_92, %c0_93, %c0_94] : memref<1x4x16x128xf32, #tpu.memory_space<vmem>>, vector<1x1x16x128xf32>
    %130 = vector.shape_cast %129 : vector<1x1x16x128xf32> to vector<16x128xf32>
    %131 = arith.mulf %128, %126 : vector<16x128xf32>
    %132 = arith.addf %131, %130 : vector<16x128xf32>
    %c0_95 = arith.constant 0 : index
    %c1_96 = arith.constant 1 : index
    %c0_97 = arith.constant 0 : index
    %c0_98 = arith.constant 0 : index
    %133 = vector.load %arg9[%c0_95, %c1_96, %c0_97, %c0_98] : memref<1x4x16x128xf32, #tpu.memory_space<vmem>>, vector<1x1x16x128xf32>
    %134 = vector.shape_cast %133 : vector<1x1x16x128xf32> to vector<16x128xf32>
    %135 = vector.shape_cast %132 : vector<16x128xf32> to vector<1x1x16x128xf32>
    tpu.vector_store %arg9[%c0_95, %c1_96, %c0_97, %c0_98], %135 {strides = array<i32>} : memref<1x4x16x128xf32, #tpu.memory_space<vmem>>, vector<1x1x16x128xf32>,
    %c2_99 = arith.constant 2 : index
    %136 = memref.load %arg8[%c2_99] : memref<4xf32, #tpu.memory_space<smem>>
    %137 = vector.broadcast %136 : f32 to vector<16x128xf32>
    %c2_100 = arith.constant 2 : index
    %c0_101 = arith.constant 0 : index
    %138 = memref.load %arg6[%c2_100, %c0_101] : memref<4x2xf32, #tpu.memory_space<smem>>
    %139 = vector.broadcast %138 : f32 to vector<16x128xf32>
    %140 = arith.mulf %139, %85 : vector<16x128xf32>
    %141 = arith.addf %137, %140 : vector<16x128xf32>
    %c2_102 = arith.constant 2 : index
    %c1_103 = arith.constant 1 : index
    %142 = memref.load %arg6[%c2_102, %c1_103] : memref<4x2xf32, #tpu.memory_space<smem>>
    %143 = vector.broadcast %142 : f32 to vector<16x128xf32>
    %144 = arith.mulf %143, %87 : vector<16x128xf32>
    %145 = arith.addf %141, %144 : vector<16x128xf32>
    %146 = arith.negf %145 : vector<16x128xf32>
    %147 = math.exp %146 : vector<16x128xf32>
    %cst_104 = arith.constant 1.000000e+00 : f32
    %148 = vector.broadcast %cst_104 : f32 to vector<16x128xf32>
    %149 = arith.addf %148, %147 : vector<16x128xf32>
    %150 = arith.divf %148, %149 : vector<16x128xf32>
    %c0_105 = arith.constant 0 : index
    %c2_106 = arith.constant 2 : index
    %c0_107 = arith.constant 0 : index
    %c0_108 = arith.constant 0 : index
    %151 = vector.load %arg2[%c0_105, %c2_106, %c0_107, %c0_108] : memref<1x4x16x128xf32, #tpu.memory_space<vmem>>, vector<1x1x16x128xf32>
    %152 = vector.shape_cast %151 : vector<1x1x16x128xf32> to vector<16x128xf32>
    %c0_109 = arith.constant 0 : index
    %c2_110 = arith.constant 2 : index
    %c0_111 = arith.constant 0 : index
    %c0_112 = arith.constant 0 : index
    %153 = vector.load %arg3[%c0_109, %c2_110, %c0_111, %c0_112] : memref<1x4x16x128xf32, #tpu.memory_space<vmem>>, vector<1x1x16x128xf32>
    %154 = vector.shape_cast %153 : vector<1x1x16x128xf32> to vector<16x128xf32>
    %155 = arith.mulf %152, %150 : vector<16x128xf32>
    %156 = arith.addf %155, %154 : vector<16x128xf32>
    %c0_113 = arith.constant 0 : index
    %c2_114 = arith.constant 2 : index
    %c0_115 = arith.constant 0 : index
    %c0_116 = arith.constant 0 : index
    %157 = vector.load %arg9[%c0_113, %c2_114, %c0_115, %c0_116] : memref<1x4x16x128xf32, #tpu.memory_space<vmem>>, vector<1x1x16x128xf32>
    %158 = vector.shape_cast %157 : vector<1x1x16x128xf32> to vector<16x128xf32>
    %159 = vector.shape_cast %156 : vector<16x128xf32> to vector<1x1x16x128xf32>
    tpu.vector_store %arg9[%c0_113, %c2_114, %c0_115, %c0_116], %159 {strides = array<i32>} : memref<1x4x16x128xf32, #tpu.memory_space<vmem>>, vector<1x1x16x128xf32>,
    %c3_117 = arith.constant 3 : index
    %160 = memref.load %arg8[%c3_117] : memref<4xf32, #tpu.memory_space<smem>>
    %161 = vector.broadcast %160 : f32 to vector<16x128xf32>
    %c3_118 = arith.constant 3 : index
    %c0_119 = arith.constant 0 : index
    %162 = memref.load %arg6[%c3_118, %c0_119] : memref<4x2xf32, #tpu.memory_space<smem>>
    %163 = vector.broadcast %162 : f32 to vector<16x128xf32>
    %164 = arith.mulf %163, %85 : vector<16x128xf32>
    %165 = arith.addf %161, %164 : vector<16x128xf32>
    %c3_120 = arith.constant 3 : index
    %c1_121 = arith.constant 1 : index
    %166 = memref.load %arg6[%c3_120, %c1_121] : memref<4x2xf32, #tpu.memory_space<smem>>
    %167 = vector.broadcast %166 : f32 to vector<16x128xf32>
    %168 = arith.mulf %167, %87 : vector<16x128xf32>
    %169 = arith.addf %165, %168 : vector<16x128xf32>
    %170 = arith.negf %169 : vector<16x128xf32>
    %171 = math.exp %170 : vector<16x128xf32>
    %cst_122 = arith.constant 1.000000e+00 : f32
    %172 = vector.broadcast %cst_122 : f32 to vector<16x128xf32>
    %173 = arith.addf %172, %171 : vector<16x128xf32>
    %174 = arith.divf %172, %173 : vector<16x128xf32>
    %c0_123 = arith.constant 0 : index
    %c3_124 = arith.constant 3 : index
    %c0_125 = arith.constant 0 : index
    %c0_126 = arith.constant 0 : index
    %175 = vector.load %arg2[%c0_123, %c3_124, %c0_125, %c0_126] : memref<1x4x16x128xf32, #tpu.memory_space<vmem>>, vector<1x1x16x128xf32>
    %176 = vector.shape_cast %175 : vector<1x1x16x128xf32> to vector<16x128xf32>
    %c0_127 = arith.constant 0 : index
    %c3_128 = arith.constant 3 : index
    %c0_129 = arith.constant 0 : index
    %c0_130 = arith.constant 0 : index
    %177 = vector.load %arg3[%c0_127, %c3_128, %c0_129, %c0_130] : memref<1x4x16x128xf32, #tpu.memory_space<vmem>>, vector<1x1x16x128xf32>
    %178 = vector.shape_cast %177 : vector<1x1x16x128xf32> to vector<16x128xf32>
    %179 = arith.mulf %176, %174 : vector<16x128xf32>
    %180 = arith.addf %179, %178 : vector<16x128xf32>
    %c0_131 = arith.constant 0 : index
    %c3_132 = arith.constant 3 : index
    %c0_133 = arith.constant 0 : index
    %c0_134 = arith.constant 0 : index
    %181 = vector.load %arg9[%c0_131, %c3_132, %c0_133, %c0_134] : memref<1x4x16x128xf32, #tpu.memory_space<vmem>>, vector<1x1x16x128xf32>
    %182 = vector.shape_cast %181 : vector<1x1x16x128xf32> to vector<16x128xf32>
    %183 = vector.shape_cast %180 : vector<16x128xf32> to vector<1x1x16x128xf32>
    tpu.vector_store %arg9[%c0_131, %c3_132, %c0_133, %c0_134], %183 {strides = array<i32>} : memref<1x4x16x128xf32, #tpu.memory_space<vmem>>, vector<1x1x16x128xf32>,
    return
  }
  func.func @transform_0(%arg0: i32, %arg1: i32) -> (i32, i32, i32, i32) {
    %c0_i32 = arith.constant 0 : i32
    %c0_i32_0 = arith.constant 0 : i32
    %c0_i32_1 = arith.constant 0 : i32
    return %arg0, %c0_i32, %arg1, %c0_i32_0 : i32, i32, i32, i32
  }
  func.func @transform_1(%arg0: i32, %arg1: i32) -> (i32, i32, i32, i32) {
    %c0_i32 = arith.constant 0 : i32
    %c0_i32_0 = arith.constant 0 : i32
    %c0_i32_1 = arith.constant 0 : i32
    return %arg0, %c0_i32, %arg1, %c0_i32_0 : i32, i32, i32, i32
  }
  func.func @transform_2(%arg0: i32, %arg1: i32) -> (i32, i32) {
    %c0_i32 = arith.constant 0 : i32
    %c0_i32_0 = arith.constant 0 : i32
    %c0_i32_1 = arith.constant 0 : i32
    return %c0_i32, %c0_i32_0 : i32, i32
  }
  func.func @transform_3(%arg0: i32, %arg1: i32) -> (i32, i32) {
    %c0_i32 = arith.constant 0 : i32
    %c0_i32_0 = arith.constant 0 : i32
    %c0_i32_1 = arith.constant 0 : i32
    return %c0_i32, %c0_i32_0 : i32, i32
  }
  func.func @transform_4(%arg0: i32, %arg1: i32) -> (i32, i32) {
    %c0_i32 = arith.constant 0 : i32
    %c0_i32_0 = arith.constant 0 : i32
    %c0_i32_1 = arith.constant 0 : i32
    return %c0_i32, %c0_i32_0 : i32, i32
  }
  func.func @transform_5(%arg0: i32, %arg1: i32) -> i32 {
    %c0_i32 = arith.constant 0 : i32
    %c0_i32_0 = arith.constant 0 : i32
    return %c0_i32 : i32
  }
  func.func @transform_6(%arg0: i32, %arg1: i32) -> i32 {
    %c0_i32 = arith.constant 0 : i32
    %c0_i32_0 = arith.constant 0 : i32
    return %c0_i32 : i32
  }
  func.func @transform_7(%arg0: i32, %arg1: i32) -> (i32, i32, i32, i32) {
    %c0_i32 = arith.constant 0 : i32
    %c0_i32_0 = arith.constant 0 : i32
    %c0_i32_1 = arith.constant 0 : i32
    return %arg0, %c0_i32, %arg1, %c0_i32_0 : i32, i32, i32, i32
  }
}

</mosaic_0001>

<bundles_post_ra>
// kernel: tpu_custom_call.1
= control target key start
LH: loop header
LB: loop body
LE: loop exit
PB: predicated region body
PF: predicated region fallthrough
CT: control target
= control target key end

     0   :  { %s1845_s0 = inlined_call_operand.hbm [shape: f32[2,4,16,128], index: 0, kind: input, shape index: {}]   ;;  %s1846_s1 = inlined_call_operand.hbm [shape: f32[2,4,16,128], index: 1, kind: input, shape index: {}]   ;;  %s1847_s2 = inlined_call_operand.vmem [shape: f32[2,4], index: 2, kind: input, shape index: {}]   ;;  %s1848_s3 = inlined_call_operand.vmem [shape: f32[2,4], index: 3, kind: input, shape index: {}]   ;;  %s1849_s4 = inlined_call_operand.vmem [shape: f32[4,2], index: 4, kind: input, shape index: {}]   ;;  %s1850_s5 = inlined_call_operand.vmem [shape: f32[2], index: 5, kind: input, shape index: {}]   ;;  %s1851_s6 = inlined_call_operand.vmem [shape: f32[4], index: 6, kind: input, shape index: {}]   ;;  %s1852_s7 = inlined_call_operand.hbm [shape: f32[2,4,16,128], index: 7, kind: output, shape index: {}]  }
   0x1   :  { %1859 = sst [smem:[#allocation25_spill]] %s1845_s0 }
   0x2   :  { %1860 = sst [smem:[#allocation26_spill]] %s1847_s2 }
   0x3   :  { %1861 = sst [smem:[#allocation27_spill]] %s1848_s3 }
   0x4   :  { %1862 = sst [smem:[#allocation28_spill]] %s1849_s4 }
   0x5   :  { %1863 = sst [smem:[#allocation29_spill]] %s1850_s5 }
   0x6   :  { %1864 = sst [smem:[#allocation30_spill]] %s1851_s6 }
   0x7   :  { %12 = vsyncpa [#allocation3], 0 }
   0x8   :  { %14 = vsyncpa [#allocation3 + $0x1], 0 }
   0x9   :  { %15 = vsyncpa [#allocation7], 0 }
   0xa   :  { %17 = vsyncpa [#allocation7 + $0x1], 0 }
   0xb   :  { %18 = vsyncpa [#allocation5], 0 }
   0xc   :  { %19 = vsyncpa [#allocation10], 0 }
   0xd   :  { %20 = vsyncpa [#allocation13], 0 }
   0xe   :  { %21 = vsyncpa [#allocation4], 0 }
   0xf   :  { %23 = vsyncpa [#allocation4 + $0x1], 0  ;;  %s1404_s24 = smov 0   ;;  %s1406_s25 = smov 0  }
  0x10   :  { %s1408_s26 = smov 0   ;;  %s1410_s27 = smov 0  }
  0x11   :  { %s1412_s28 = smov 0   ;;  %s1414_s29 = smov 0  }
  0x12 LB: > { %1865 = sst [smem:[#allocation22_spill]] %s1346_s28  ;;  %s874_s10 = sadd.s32 4294967295, %s1350_s29   ;;  %s1350_s29 = sphi %s1414_s29, %s29_s29   ;;  %s1346_s28 = sphi %s1412_s28, %s1890_s28   ;;  %s1342_s27 = sphi %s1410_s27, %s1889_s27   ;;  %s1338_s26 = sphi %s1408_s26, %s1893_s26   ;;  %s1334_s25 = sphi %s1406_s25, %s1892_s25   ;;  %s1330_s24 = sphi %s1404_s24, %s1891_s24  }
  0x13   : > { %s1866_s3 = sld [smem:[#allocation27_spill]]  ;;  %p876_p0 = scmp.ge.s32.totalorder %s1350_s29, 1 }
  0x14   : > { %p1441_p1 = scmp.eq.s32.totalorder %s874_s10, 0  ;;  %p235_p2 = scmp.lt.s32.totalorder %s1350_s29, 3 }
  0x15   : > { %s1869_s5 = sld [smem:[#allocation29_spill]] }
  0x16   : > { %s1867_s11 = scalar_select %p1441_p1, 1, 0 }
  0x17   : > { %p1446_p3 = pnand %p876_p0, %p235_p2  ;;  %s1870_s2 = sld [smem:[#allocation26_spill]] }
  0x18   : > { %s1872_s4 = sld [smem:[#allocation28_spill]] }
  0x19   : > { %s259_s9 = sshll.u32 %s1866_s3, 4  ;;  %p995_p5 = pneg %p1446_p3  ;;  %s260_s9 = int_to_ptr.vmem [resolvable:$true] %s259_s9 }
  0x1a   : > { %s1868_s12 = scalar_select %p1446_p3, 1, 0 }
  0x1b   : > { %s281_s15 = sshll.u32 %s1869_s5, 4  ;;  %p1461_p6 = pnand %p995_p5, %p1441_p1  ;;  %s282_s15 = int_to_ptr.vmem [resolvable:$true] %s281_s15 }
  0x1c   : > { %s1123_s23 = scalar_lea.vmem %s260_s9, 32  ;;  %p1131_p11 = scmp.lt.s32.totalorder %s260_s9, %s260_s9 }
  0x1d   : > { %s248_s18 = sshll.u32 %s1870_s2, 4  ;;  %p1124_p7 = scmp.ne.s32.totalorder %s260_s9, %s1123_s23  ;;  %s1465_s18 = int_to_ptr.vmem [resolvable:$true] %s248_s18 }
  0x1e   : > { %s270_s22 = sshll.u32 %s1872_s4, 4  ;;  %p1472_p8 = pneg %p1461_p6  ;;  %s271_s22 = int_to_ptr.vmem [resolvable:$true] %s270_s22 }
  0x1f   : > { %p1132_p12 = scmp.lt.s32.totalorder %s1123_s23, %s1123_s23 }
  0x20   : > { %p1126_p9 = pnand %p1472_p8, %p1124_p7 }
  0x21   : > { %p1133_p13 = por %p1132_p12, %p1131_p11 }
  0x22   : > { %p1127_p10 = pneg %p1126_p9 }
  0x24   : > { %p1134_p0 = pnand %p1133_p13, %p1127_p10 }
  0x26   : > { %1137 = shalt.err (!%p1134_p0)
}
  0x27   : > { %s1352_s8 = smov [#allocation9]   ;;  %s1138_s13 = scalar_lea.vmem %s282_s15, 16 }
  0x28   : > { %1001 = dma.vmem_to_smem (!%p1461_p6), %s260_s9, 32, %s1352_s8, [#allocation10]  }
  0x29   : > { %p1139_p2 = scmp.ne.s32.totalorder %s282_s15, %s1138_s13  ;;  %p1146_p3 = scmp.lt.s32.totalorder %s282_s15, %s282_s15 }
  0x2a   : > { %p1147_p1 = scmp.lt.s32.totalorder %s1138_s13, %s1138_s13 }
  0x2b   : > { %p1141_p5 = pnand %p1139_p2, %p1472_p8 }
  0x2c   : > { %p1148_p7 = por %p1147_p1, %p1146_p3 }
  0x2d   : > { %p1142_p4 = pneg %p1141_p5 }
  0x2f   : > { %p1149_p9 = pnand %p1148_p7, %p1142_p4 }
  0x31   : > { %1152 = shalt.err (!%p1149_p9)
}
  0x32   : > { %s1353_s14 = smov [#allocation12]   ;;  %s1153_s16 = scalar_lea.vmem %s1465_s18, 32 }
  0x33   : > { %1007 = dma.vmem_to_smem (!%p1461_p6), %s282_s15, 16, %s1353_s14, [#allocation13]  }
  0x34   : > { %p1154_p10 = scmp.ne.s32.totalorder %s1465_s18, %s1153_s16  ;;  %p1161_p13 = scmp.lt.s32.totalorder %s1465_s18, %s1465_s18 }
  0x35   : > { %p1162_p0 = scmp.lt.s32.totalorder %s1153_s16, %s1153_s16 }
  0x36   : > { %p1156_p11 = pnand %p1154_p10, %p1472_p8 }
  0x37   : > { %p1163_p2 = por %p1162_p0, %p1161_p13 }
  0x38   : > { %p1157_p12 = pneg %p1156_p11 }
  0x3a   : > { %p1164_p1 = pnand %p1163_p2, %p1157_p12 }
  0x3c   : > { %1167 = shalt.err (!%p1164_p1)
}
  0x3d   : > { %s1354_s9 = smov [#allocation8]   ;;  %s1168_s15 = scalar_lea.vmem %s271_s22, 64 }
  0x3e   : > { %998 = dma.vmem_to_smem (!%p1461_p6), %s1465_s18, 32, %s1354_s9, [#allocation5]  }
  0x3f   : > { %p1169_p3 = scmp.ne.s32.totalorder %s271_s22, %s1168_s15  ;;  %p1176_p7 = scmp.lt.s32.totalorder %s271_s22, %s271_s22 }
  0x40   : > { %p1177_p9 = scmp.lt.s32.totalorder %s1168_s15, %s1168_s15 }
  0x41   : > { %p1171_p4 = pnand %p1169_p3, %p1472_p8 }
  0x42   : > { %p1178_p10 = por %p1177_p9, %p1176_p7 }
  0x43   : > { %p1172_p5 = pneg %p1171_p4 }
  0x45   : > { %p1179_p11 = pnand %p1178_p10, %p1172_p5 }
  0x47   : > { %1182 = shalt.err (!%p1179_p11)
}
  0x48   : > { %s1355_s21 = smov [#allocation11]   ;;  %s1874_s6 = sld [smem:[#allocation30_spill]] }
  0x49   : > { %1004 = dma.vmem_to_smem (!%p1461_p6), %s271_s22, 64, %s1355_s21, [#allocation10]  }
  0x4e   : > { %s292_s8 = sshll.u32 %s1874_s6, 4  ;;  %s293_s8 = int_to_ptr.vmem [resolvable:$true] %s292_s8 }
  0x4f   : > { %s1183_s13 = scalar_lea.vmem %s293_s8, 16  ;;  %p1191_p2 = scmp.lt.s32.totalorder %s293_s8, %s293_s8 }
  0x50   : > { %p1184_p12 = scmp.ne.s32.totalorder %s293_s8, %s1183_s13  ;;  %p1192_p1 = scmp.lt.s32.totalorder %s1183_s13, %s1183_s13 }
  0x52   : > { %p1186_p13 = pnand %p1184_p12, %p1472_p8  ;;  %p1193_p3 = por %p1192_p1, %p1191_p2 }
  0x54   : > { %p1187_p0 = pneg %p1186_p13 }
  0x56   : > { %p1194_p4 = pnand %p1193_p3, %p1187_p0 }
  0x58   : > { %1197 = shalt.err (!%p1194_p4)
}
  0x59   : > { %s1356_s14 = smov [#allocation14]   ;;  %s875_s22 = sadd.s32 4294967294, %s1350_s29  }
  0x5a   : > { %1010 = dma.vmem_to_smem (!%p1461_p6), %s293_s8, 16, %s1356_s14, [#allocation13]  }
  0x5b   : > { %s41_s30 = sadd.s32 1, %s1346_s28  ;;  %s50_s16 = sadd.s32 1, %s1338_s26 }
  0x5c   : > { %p43_p8 = scmp.ge.s32.totalorder %s41_s30, 2  ;;  %p57_p5 = scmp.ne.s32.totalorder %s1338_s26, %s1334_s25 }
  0x5d   : > { %p58_p7 = scmp.eq.s32.totalorder %s1350_s29, 0  ;;  %p63_p9 = scmp.ne.s32.totalorder %s1334_s25, %s1330_s24 }
  0x5e   : > { %s1895_s30 = smov (%p43_p8, %s41_s30), 0  ;;  %p1877_p11 = scmp.ne.s32.totalorder %s1867_s11, 0 }
  0x5f   : > { %1875 = sst [smem:[#allocation23_spill]] %s1895_s30  ;;  %p1518_p10 = por %p58_p7, %p57_p5 }
  0x60   : > { %p1524_p6 = por %p1877_p11, %p63_p9  ;;  %s45_s17 = ssub.s32 %s1346_s28, %s1895_s30 }
  0x61   : > { %p222_p12 = scmp.eq.s32.totalorder %s874_s10, 1  ;;  %p48_p13 = scmp.eq.s32.totalorder %s45_s17, 0 }
  0x62   : > { %p228_p0 = scmp.eq.s32.totalorder %s875_s22, 1  ;;  %p1027_p1 = scmp.lt.s32.totalorder %s1350_s29, 2 }
  0x63   : > { %p1532_p2 = por %p222_p12, %p57_p5  ;;  %s1545_s18 = sand.u32 1, %s1338_s26  }
  0x64   : > { %s1538_s15 = scalar_select %p48_p13, %s1338_s26, %s50_s16  }
  0x65   : > { %p1540_p3 = por %p228_p0, %p63_p9  ;;  %s1856_s23 = sshll.u32 %s1545_s18, 6 }
  0x66   : > { %1880 = sst [smem:[#allocation24_spill]] %s1538_s15  ;;  %s966_s10 = sshll.u32 %s1346_s28, 10 }
  0x67   : > { %s1882_s0 = sld [smem:[#allocation25_spill]]  ;;  %s307_s22 = scalar_lea.vmem [#allocation2], %s1856_s23 }
  0x68   : > { %s316_s17 = sshll.u32 %s307_s22, 4  ;;  %p1556_p4 = pnand %p1027_p1, %p1518_p10  ;;  %s317_s17 = int_to_ptr.vmem [resolvable:$true] %s316_s17 }
  0x69   : > { %s304_s2 = scalar_lea.sflag [#allocation3], %s1545_s18  ;;  %s1211_s3 = scalar_lea.vmem %s317_s17, 1024 }
  0x6a   : > { %p1200_p8 = pneg %p1556_p4  ;;  %p1212_p5 = scmp.ne.s32.totalorder %s317_s17, %s1211_s3 }
  0x6b   : > { %s1357_s8 = smov [#allocation2]  }
  0x6c   : > { %p1214_p7 = pnand %p1212_p5, %p1200_p8  ;;  %s1216_s13 = sshll.u32 %s1357_s8, 4  ;;  %s1217_s13 = int_to_ptr.vmem [resolvable:$false] %s1216_s13 }
  0x6d   : > { %s315_s14 = scalar_lea.hbm %s1882_s0, %s966_s10  ;;  %s1218_s22 = scalar_lea.vmem %s1217_s13, 2048 }
  0x6e   : > { %p1215_p9 = pneg %p1214_p7  ;;  %p1219_p11 = scmp.lt.s32.totalorder %s317_s17, %s1217_s13 }
  0x6f   : > { %p1220_p10 = scmp.lt.s32.totalorder %s1218_s22, %s1211_s3 }
  0x71   : > { %p1221_p12 = por %p1220_p10, %p1219_p11 }
  0x73   : > { %p1222_p13 = pnand %p1221_p12, %p1215_p9 }
  0x75   : > { %1225 = shalt.err (!%p1222_p13)
}
  0x76   : > { %s1358_s19 = smov 128   ;;  %s1359_s23 = smov 8  }
  0x77   : > { %1014 = dma.hbm_to_vmem [thread:$0]  (!%p1556_p4), %s315_s14, 1024, %s317_s17, %s304_s2, %s1358_s19, %s1358_s19, %s1359_s23  }
  0x78   : > { %s338_s5 = scalar_lea.hbm %s1846_s1, %s966_s10  ;;  %s1884_s8 = sshll.u32 %s1545_s18, 6 }
  0x79   : > { %s330_s6 = scalar_lea.vmem [#allocation6], %s1884_s8  ;;  %s327_s3 = scalar_lea.sflag [#allocation7], %s1545_s18 }
  0x7a   : > { %s339_s30 = sshll.u32 %s330_s6, 4  ;;  %s1360_s22 = smov [#allocation6]   ;;  %s340_s30 = int_to_ptr.vmem [resolvable:$true] %s339_s30 }
  0x7b   : > { %s1239_s13 = scalar_lea.vmem %s340_s30, 1024  ;;  %s1244_s28 = sshll.u32 %s1360_s22, 4  ;;  %s1245_s28 = int_to_ptr.vmem [resolvable:$false] %s1244_s28 }
  0x7c   : > { %p1240_p0 = scmp.ne.s32.totalorder %s340_s30, %s1239_s13  ;;  %s1246_s15 = scalar_lea.vmem %s1245_s28, 2048 }
  0x7d   : > { %p1247_p7 = scmp.lt.s32.totalorder %s340_s30, %s1245_s28  ;;  %p1248_p9 = scmp.lt.s32.totalorder %s1246_s15, %s1239_s13 }
  0x7e   : > { %p1242_p1 = pnand %p1240_p0, %p1200_p8 }
  0x7f   : > { %p1249_p11 = por %p1248_p9, %p1247_p7 }
  0x80   : > { %p1243_p5 = pneg %p1242_p1 }
  0x82   : > { %p1250_p10 = pnand %p1249_p11, %p1243_p5 }
  0x84   : > { %1253 = shalt.err (!%p1250_p10)
}
  0x85   : > { %1017 = dma.hbm_to_vmem [thread:$0]  (!%p1556_p4), %s338_s5, 1024, %s340_s30, %s327_s3, %s1358_s19, %s1358_s19, %s1359_s23  }
  0x86   : > { %p1885_p12 = scmp.ne.s32.totalorder %s1868_s12, 0 }
  0x87   : > { %s1582_s0 = sand.u32 (!%p1885_p12), 1, %s1334_s25  }
  0x88   : > { %351 = sbr.rel (%p1885_p12) target bundleno = 249 (0xf9), region = 48  ;;  %s1585_s2 = sshll.u32 (!%p1885_p12), %s1582_s0, 6 }
  0x89   : > { %s354_s4 = scalar_lea.sflag (!%p1885_p12), [#allocation3], %s1582_s0  ;;  %s1589_s6 = scalar_lea.vmem (!%p1885_p12), [#allocation2], %s1585_s2 }
  0x8d   : > { %1305 = dma.done.wait (%p1524_p6), %s354_s4, 1024  }
  0x8e   : > { %1307 = vsyncadd (%p1524_p6), %s354_s4, 4294966272  ;;  %s363_s5 = scalar_lea.sflag [#allocation7], %s1582_s0  ;;  %s1597_s28 = scalar_lea.vmem [#allocation6], %s1585_s2 }
  0x8f   : > { %1309 = dma.done.wait (%p1524_p6), %s363_s5, 1024  }
  0x90   : > { %1311 = vsyncadd (%p1524_p6), %s363_s5, 4294966272  ;;  %p1886_p4 = scmp.ne.s32.totalorder %s1867_s11, 0 }
  0x92   : > { %1313 = dma.done.wait (%p1886_p4), [#allocation5], 32  }
  0x93   : > { %1315 = vsyncadd (%p1886_p4), [#allocation5], 4294967264 }
  0x94   : > { %1317 = dma.done.wait (%p1886_p4), [#allocation10], 96  }
  0x95   : > { %1319 = vsyncadd (%p1886_p4), [#allocation10], 4294967200 }
  0x96   : > { %1321 = dma.done.wait (%p1886_p4), [#allocation13], 32  }
  0x97   : > { %1323 = vsyncadd (%p1886_p4), [#allocation13], 4294967264 }
  0x98   : > { %391 = sfence }
  0x99   : > { %s426_s12 = sld [smem:[#allocation12]]  ;;  %v1618_v0 = vld [vmem:[%s1589_s6] sm:$0xff]  ;;  %v1623_v1 = vld [vmem:[%s1589_s6 + $0x8] sm:$0xff]  ;;  %v1642_v12 = vld [vmem:[%s1589_s6 + $0x10] sm:$0xff] }
  0x9a   : > { %s1615_s30 = sld [smem:[#allocation12 + $0x1]]  ;;  %v1626_v2 = vld [vmem:[%s1597_s28] sm:$0xff]  ;;  %v1631_v3 = vld [vmem:[%s1597_s28 + $0x8] sm:$0xff]  ;;  %v1649_v17 = vld [vmem:[%s1597_s28 + $0x10] sm:$0xff] }
  0x9b   : > { %s434_s9 = sld [smem:[#allocation8]]  ;;  %v1664_v27 = vld [vmem:[%s1589_s6 + $0x18] sm:$0xff]  ;;  %v1669_v30 = vld [vmem:[%s1589_s6 + $0x20] sm:$0xff]  ;;  %v1695_v49 = vld [vmem:[%s1589_s6 + $0x30] sm:$0xff] }
  0x9c   : > { %s440_s15 = sld [smem:[#allocation9]]  ;;  %v1676_v37 = vld [vmem:[%s1597_s28 + $0x20] sm:$0xff]  ;;  %v1681_v38 = vld [vmem:[%s1597_s28 + $0x18] sm:$0xff]  ;;  %v1703_v56 = vld [vmem:[%s1597_s28 + $0x30] sm:$0xff] }
  0x9d   : > { %s899_s18 = sld [smem:[#allocation8 + $0x80]] }
  0x9e   : > { %s900_s23 = sld [smem:[#allocation9 + $0x80]] }
  0x9f   : > { %s1620_s10 = sld [smem:[#allocation8 + $0x1]]  ;;  %v427_v4 = vstv %s426_s12 }
  0xa0   : > { %s1628_s11 = sld [smem:[#allocation9 + $0x1]]  ;;  %v429_v9 = vstv %s1615_s30 }
  0xa1   : > { %v435_v5 = vstv %s434_s9  ;;  %s1633_s14 = sld [smem:[#allocation8 + $0x81]] }
  0xa2   : > { %v436_v6 = vmul.f32 %v435_v5, %v1618_v0  ;;  %v441_v7 = vstv %s440_s15  ;;  %s1636_s17 = sld [smem:[#allocation9 + $0x81]]  ;;  %v437_v8 = vmul.f32 %v435_v5, %v1623_v1  ;;  %v1715_v5 = vld [vmem:[%s1589_s6 + $0x28] sm:$0xff] }
  0xa3   : > { %v442_v10 = vmul.f32 %v441_v7, %v1626_v2  ;;  %v447_v11 = vstv %s899_s18  ;;  %s1644_s16 = sld [smem:[#allocation8 + $0x2]]  ;;  %v443_v13 = vmul.f32 %v441_v7, %v1631_v3 }
  0xa4   : > { %v438_v14 = vadd.f32 %v436_v6, %v427_v4  ;;  %v448_v15 = vmul.f32 %v447_v11, %v1618_v0  ;;  %v453_v16 = vstv %s900_s23  ;;  %s1651_s19 = sld [smem:[#allocation9 + $0x2]]  ;;  %v439_v18 = vadd.f32 %v437_v8, %v427_v4 }
  0xa5   : > { %v454_v19 = vmul.f32 %v453_v16, %v1626_v2  ;;  %v465_v20 = vstv %s1620_s10  ;;  %s1655_s8 = sld [smem:[#allocation8 + $0x82]]  ;;  %v449_v21 = vmul.f32 %v447_v11, %v1623_v1  ;;  %v455_v22 = vmul.f32 %v453_v16, %v1631_v3 }
  0xa6   : > { %v444_v23 = vadd.f32 %v442_v10, %v438_v14  ;;  %v450_v24 = vadd.f32 %v448_v15, %v429_v9  ;;  %v466_v25 = vmul.f32 %v1642_v12, %v465_v20  ;;  %v471_v26 = vstv %s1628_s11  ;;  %s1661_s3 = sld [smem:[#allocation9 + $0x82]]  ;;  %v1723_v10 = vld [vmem:[%s1597_s28 + $0x28] sm:$0xff] }
  0xa7   : > { %v472_v28 = vmul.f32 %v1649_v17, %v471_v26  ;;  %v477_v29 = vstv %s1633_s14  ;;  %s1671_s13 = sld [smem:[#allocation8 + $0x3]]  ;;  %v445_v31 = vadd.f32 %v443_v13, %v439_v18  ;;  %v451_v32 = vadd.f32 %v449_v21, %v429_v9  ;;  %v1735_v21 = vld [vmem:[%s1589_s6 + $0x38] sm:$0xff] }
  0xa8   : > { %v456_v33 = vadd.f32 %v454_v19, %v450_v24  ;;  %v468_v34 = vadd.f32 %v466_v25, %v444_v23  ;;  %v478_v35 = vmul.f32 %v1642_v12, %v477_v29  ;;  %v483_v36 = vstv %s1636_s17  ;;  %s1678_s22 = sld [smem:[#allocation9 + $0x3]] }
  0xa9   : > { %v484_v39 = vmul.f32 %v1649_v17, %v483_v36  ;;  %v495_v40 = vstv %s1644_s16  ;;  %s1685_s4 = sld [smem:[#allocation8 + $0x83]]  ;;  %v457_v41 = vadd.f32 %v455_v22, %v451_v32  ;;  %v467_v42 = vmul.f32 %v1664_v27, %v465_v20  ;;  %v1738_v22 = vld [vmem:[%s1597_s28 + $0x38] sm:$0xff]  ;;  %s422_s16 = scalar_lea.vmem [#allocation15], %s1585_s2 }
  0xaa   : > { %v474_v43 = vadd.f32 %v472_v28, %v468_v34  ;;  %v480_v44 = vadd.f32 %v478_v35, %v456_v33  ;;  %v496_v45 = vmul.f32 %v1669_v30, %v495_v40  ;;  %v501_v46 = vstv %s1651_s19  ;;  %s1690_s5 = sld [smem:[#allocation9 + $0x83]]  ;;  %s711_s19 = sshll.u32 %s422_s16, 4  ;;  %s1788_s19 = int_to_ptr.vmem [resolvable:$true] %s711_s19 }
  0xab   : > { %v502_v47 = vmul.f32 %v1676_v37, %v501_v46  ;;  %v507_v48 = vstv %s1655_s8  ;;  %s1697_s12 = sld [smem:[#allocation14]]  ;;  %v469_v50 = vadd.f32 %v467_v42, %v445_v31  ;;  %v473_v51 = vmul.f32 %v1681_v38, %v471_v26  ;;  %s968_s2 = sshll.u32 %s1342_s27, 10 }
  0xac   : > { %v486_v52 = vadd.f32 %v484_v39, %v480_v44  ;;  %v498_v53 = vadd.f32 %v496_v45, %v474_v43  ;;  %v508_v54 = vmul.f32 %v1669_v30, %v507_v48  ;;  %v513_v55 = vstv %s1661_s3  ;;  %s1705_s30 = sld [smem:[#allocation11]]  ;;  %s1796_s3 = scalar_lea.hbm %s1852_s7, %s968_s2 }
  0xad   : > { %v514_v57 = vmul.f32 %v1676_v37, %v513_v55  ;;  %v525_v58 = vstv %s1671_s13  ;;  %s1709_s9 = sld [smem:[#allocation11 + $0x1]]  ;;  %v475_v59 = vadd.f32 %v473_v51, %v469_v50  ;;  %v479_v60 = vmul.f32 %v1664_v27, %v477_v29  ;;  %s696_s13 = scalar_lea.sflag [#allocation4], %s1582_s0 }
  0xae   : > { %v504_v61 = vadd.f32 %v502_v47, %v498_v53  ;;  %v510_v62 = vadd.f32 %v508_v54, %v486_v52  ;;  %v526_v63 = vmul.f32 %v1695_v49, %v525_v58  ;;  %v531_v4 = vstv %s1678_s22  ;;  %s1717_s15 = sld [smem:[#allocation14 + $0x1]]  ;;  %s1254_s22 = scalar_lea.vmem %s1788_s19, 1024 }
  0xaf   : > { %v532_v6 = vmul.f32 %v1703_v56, %v531_v4  ;;  %v537_v7 = vstv %s1685_s4  ;;  %v481_v8 = vadd.f32 %v479_v60, %v457_v41  ;;  %v485_v9 = vmul.f32 %v1681_v38, %v483_v36  ;;  %s1725_s18 = sld [smem:[#allocation11 + $0x80]]  ;;  %p1255_p6 = scmp.ne.s32.totalorder %s1788_s19, %s1254_s22 }
  0xb0   : > { %v516_v11 = vadd.f32 %v514_v57, %v510_v62  ;;  %v528_v13 = vadd.f32 %v526_v63, %v504_v61  ;;  %v538_v14 = vmul.f32 %v1695_v49, %v537_v7  ;;  %v543_v15 = vstv %s1690_s5  ;;  %s1729_s23 = sld [smem:[#allocation11 + $0x81]]  ;;  %s1361_s4 = smov [#allocation15]  }
  0xb1   : > { %v544_v16 = vmul.f32 %v1703_v56, %v543_v15  ;;  %v553_v18 = vstv %s1697_s12  ;;  %v487_v19 = vadd.f32 %v485_v9, %v481_v8  ;;  %v497_v20 = vmul.f32 %v1715_v5, %v495_v40  ;;  %s1740_s10 = sld [smem:[#allocation14 + $0x2]]  ;;  %p1256_p8 = pnand %p1255_p6, %p1532_p2 }
  0xb2   : > { %v534_v23 = vadd.f32 %v532_v6, %v528_v13  ;;  %v540_v24 = vadd.f32 %v538_v14, %v516_v11  ;;  %v555_v25 = vstv %s1705_s30  ;;  %v503_v26 = vmul.f32 %v1723_v10, %v501_v46  ;;  %s1744_s11 = sld [smem:[#allocation11 + $0x100]]  ;;  %s1258_s5 = sshll.u32 %s1361_s4, 4  ;;  %s1259_s5 = int_to_ptr.vmem [resolvable:$false] %s1258_s5 }
  0xb3   : > { %v561_v28 = vstv %s1709_s9  ;;  %v499_v29 = vadd.f32 %v497_v20, %v475_v59  ;;  %v509_v31 = vmul.f32 %v1715_v5, %v507_v48  ;;  %v515_v32 = vmul.f32 %v1723_v10, %v513_v55  ;;  %s1749_s6 = sld [smem:[#allocation11 + $0x101]]  ;;  %p1257_p13 = pneg %p1256_p8 }
  0xb4   : > { %v546_v33 = vadd.f32 %v544_v16, %v540_v24  ;;  %v548_v34 = vmax.f32 %v534_v23, 0.0  ;;  %v527_v35 = vmul.f32 %v1735_v21, %v525_v58  ;;  %v533_v36 = vmul.f32 %v1738_v22, %v531_v4  ;;  %s1753_s28 = sld [smem:[#allocation14 + $0x3]]  ;;  %s1260_s12 = scalar_lea.vmem %s1259_s5, 2048 }
  0xb5   : > { %v505_v39 = vadd.f32 %v503_v26, %v499_v29  ;;  %v511_v40 = vadd.f32 %v509_v31, %v487_v19  ;;  %v539_v41 = vmul.f32 %v1735_v21, %v537_v7  ;;  %v545_v42 = vmul.f32 %v1738_v22, %v543_v15  ;;  %s1757_s14 = sld [smem:[#allocation11 + $0x180]]  ;;  %p1261_p0 = scmp.lt.s32.totalorder %s1788_s19, %s1259_s5 }
  0xb6   : > { %v550_v43 = vmax.f32 %v546_v33, 0.0  ;;  %v556_v44 = vmul.f32 %v555_v25, %v548_v34  ;;  %v585_v45 = vstv %s1717_s15  ;;  %v587_v46 = vstv %s1725_s18  ;;  %s1761_s17 = sld [smem:[#allocation11 + $0x181]]  ;;  %p1262_p1 = scmp.lt.s32.totalorder %s1260_s12, %s1254_s22 }
  0xb7   : > { %v517_v47 = vadd.f32 %v515_v32, %v511_v40  ;;  %v529_v48 = vadd.f32 %v527_v35, %v505_v39  ;;  %v588_v50 = vmul.f32 %v587_v46, %v548_v34  ;;  %v593_v51 = vstv %s1729_s23 }
  0xb8   : > { %v558_v52 = vadd.f32 %v556_v44, %v553_v18  ;;  %v562_v53 = vmul.f32 %v561_v28, %v550_v43  ;;  %v594_v54 = vmul.f32 %v593_v51, %v550_v43  ;;  %v622_v55 = vstv %s1740_s10  ;;  %p1263_p5 = por %p1262_p1, %p1261_p0 }
  0xb9   : > { %v535_v57 = vadd.f32 %v533_v36, %v529_v48  ;;  %v541_v58 = vadd.f32 %v539_v41, %v517_v47  ;;  %v590_v59 = vadd.f32 %v588_v50, %v585_v45  ;;  %v624_v60 = vstv %s1744_s11 }
  0xba   : > { %v564_v61 = vadd.f32 %v562_v53, %v558_v52  ;;  %v625_v62 = vmul.f32 %v624_v60, %v548_v34  ;;  %v630_v63 = vstv %s1749_s6  ;;  %v659_v4 = vstv %s1753_s28  ;;  %p1264_p7 = pnand %p1263_p5, %p1257_p13 }
  0xbb   : > { %v547_v6 = vadd.f32 %v545_v42, %v541_v58  ;;  %v549_v7 = vmax.f32 %v535_v57, 0.0  ;;  %v596_v8 = vadd.f32 %v594_v54, %v590_v59  ;;  %v631_v9 = vmul.f32 %v630_v63, %v550_v43 }
  0xbc   : > { %v926_v11 = vmul.f32 -1.442695, %v564_v61  ;;  %v627_v13 = vadd.f32 %v625_v62, %v622_v55  ;;  %v661_v14 = vstv %s1757_s14  ;;  %v667_v15 = vstv %s1761_s17 }
  0xbd   : > { %v551_v16 = vmax.f32 %v547_v6, 0.0  ;;  %v557_v19 = vmul.f32 %v555_v25, %v549_v7  ;;  %v931_v20 = vmul.f32 -1.442695, %v596_v8  ;;  %v589_v23 = vmul.f32 %v587_v46, %v549_v7 }
  0xbe   : > { %1091 = vpow2.f32 %v926_v11  ;;  %v633_v24 = vadd.f32 %v631_v9, %v627_v13  ;;  %v626_v26 = vmul.f32 %v624_v60, %v549_v7  ;;  %v662_v29 = vmul.f32 %v661_v14, %v548_v34 }
  0xbf   : > { %v559_v31 = vadd.f32 %v557_v19, %v553_v18  ;;  %v563_v32 = vmul.f32 %v561_v28, %v551_v16  ;;  %1093 = vpow2.f32 %v931_v20  ;;  %v591_v33 = vadd.f32 %v589_v23, %v585_v45 }
  0xc0   : > { %v595_v35 = vmul.f32 %v593_v51, %v551_v16  ;;  %v942_v36 = vmul.f32 -1.442695, %v633_v24  ;;  %v628_v39 = vadd.f32 %v626_v26, %v622_v55  ;;  %v632_v40 = vmul.f32 %v630_v63, %v551_v16 }
  0xc1   : > { %v565_v41 = vadd.f32 %v563_v32, %v559_v31  ;;  %v664_v42 = vadd.f32 %v662_v29, %v659_v4  ;;  %v668_v44 = vmul.f32 %v667_v15, %v550_v43  ;;  %v663_v47 = vmul.f32 %v661_v14, %v549_v7 }
  0xc2   : > { %v597_v25 = vadd.f32 %v595_v35, %v591_v33  ;;  %1095 = vpow2.f32 %v942_v36  ;;  %v634_v46 = vadd.f32 %v632_v40, %v628_v39  ;;  %v669_v48 = vmul.f32 %v667_v15, %v551_v16 }
  0xc3   : > { %v927_v50 = vmul.f32 -1.442695, %v565_v41  ;;  %v670_v52 = vadd.f32 %v668_v44, %v664_v42  ;;  %v665_v34 = vadd.f32 %v663_v47, %v659_v4 }
  0xc4   : > { %v932_v53 = vmul.f32 -1.442695, %v597_v25  ;;  %v943_v18 = vmul.f32 -1.442695, %v634_v46 }
  0xc5   : > { %1097 = vpow2.f32 %v927_v50  ;;  %v953_v28 = vmul.f32 -1.442695, %v670_v52  ;;  %v671_v45 = vadd.f32 %v669_v48, %v665_v34 }
  0xc6   : > { %1099 = vpow2.f32 %v932_v53 }
  0xc7   : > { %1101 = vpow2.f32 %v943_v18  ;;  %v954_v51 = vmul.f32 -1.442695, %v671_v45 }
  0xc8   : > { %1103 = vpow2.f32 %v953_v28 }
  0xc9   : > { %1105 = vpow2.f32 %v954_v51 }
  0xcb   : > { %v1092_v54 = vpop.eup %1091 }
  0xcc   : > { %v1094_v43 = vpop.eup %1093  ;;  %v572_v55 = vadd.f32 1.0, %v1092_v54 }
  0xcd   : > { %v604_v57 = vadd.f32 1.0, %v1094_v43 }
  0xce   : > { %1107 = vrcp.f32 %v572_v55 }
  0xcf   : > { %v1096_v58 = vpop.eup %1095  ;;  %1109 = vrcp.f32 %v604_v57 }
  0xd0   : > { %v641_v59 = vadd.f32 1.0, %v1096_v58 }
  0xd2   : > { %v1098_v60 = vpop.eup %1097  ;;  %1111 = vrcp.f32 %v641_v59 }
  0xd3   : > { %v1100_v61 = vpop.eup %1099  ;;  %v573_v62 = vadd.f32 1.0, %v1098_v60 }
  0xd4   : > { %v1102_v63 = vpop.eup %1101  ;;  %v605_v4 = vadd.f32 1.0, %v1100_v61 }
  0xd5   : > { %v1104_v6 = vpop.eup %1103  ;;  %1113 = vrcp.f32 %v573_v62  ;;  %v642_v7 = vadd.f32 1.0, %v1102_v63 }
  0xd6   : > { %v1106_v8 = vpop.eup %1105  ;;  %1115 = vrcp.f32 %v605_v4  ;;  %v678_v9 = vadd.f32 1.0, %v1104_v6 }
  0xd7   : > { %1117 = vrcp.f32 %v642_v7  ;;  %v679_v11 = vadd.f32 1.0, %v1106_v8 }
  0xd8   : > { %1119 = vrcp.f32 %v678_v9 }
  0xd9   : > { %1121 = vrcp.f32 %v679_v11 }
  0xdb   : > { %v1108_v13 = vpop.eup %1107 }
  0xdc   : > { %v1110_v14 = vpop.eup %1109  ;;  %v578_v15 = vmul.f32 %v1108_v13, %v1618_v0 }
  0xdd   : > { %v614_v16 = vmul.f32 %v1110_v14, %v1642_v12 }
  0xde   : > { %v580_v19 = vadd.f32 %v578_v15, %v1626_v2 }
  0xdf   : > { %v1112_v20 = vpop.eup %1111  ;;  %v616_v23 = vadd.f32 %v1649_v17, %v614_v16 }
  0xe0   : > { %582 = vst [vmem:[%s422_s16] sm:$0xff] %v580_v19  ;;  %v651_v24 = vmul.f32 %v1112_v20, %v1669_v30 }
  0xe1   : > { %937 = vst [vmem:[%s422_s16 + $0x10] sm:$0xff] %v616_v23 }
  0xe2   : > { %v1114_v26 = vpop.eup %1113  ;;  %v653_v29 = vadd.f32 %v1676_v37, %v651_v24 }
  0xe3   : > { %v1116_v31 = vpop.eup %1115  ;;  %v579_v32 = vmul.f32 %v1114_v26, %v1623_v1 }
  0xe4   : > { %v1118_v0 = vpop.eup %1117  ;;  %v615_v12 = vmul.f32 %v1116_v31, %v1664_v27  ;;  %948 = vst [vmem:[%s422_s16 + $0x20] sm:$0xff] %v653_v29 }
  0xe5   : > { %v1120_v2 = vpop.eup %1119  ;;  %v581_v17 = vadd.f32 %v579_v32, %v1631_v3  ;;  %v652_v33 = vmul.f32 %v1118_v0, %v1715_v5 }
  0xe6   : > { %v1122_v30 = vpop.eup %1121  ;;  %v617_v35 = vadd.f32 %v1681_v38, %v615_v12  ;;  %v688_v37 = vmul.f32 %v1120_v2, %v1695_v49 }
  0xe7   : > { %583 = vst [vmem:[%s422_s16 + $0x8] sm:$0xff] %v581_v17  ;;  %v654_v1 = vadd.f32 %v1723_v10, %v652_v33  ;;  %v689_v27 = vmul.f32 %v1122_v30, %v1735_v21 }
  0xe8   : > { %938 = vst [vmem:[%s422_s16 + $0x18] sm:$0xff] %v617_v35  ;;  %v690_v3 = vadd.f32 %v1703_v56, %v688_v37 }
  0xe9   : > { %949 = vst [vmem:[%s422_s16 + $0x28] sm:$0xff] %v654_v1  ;;  %v691_v38 = vadd.f32 %v1738_v22, %v689_v27 }
  0xea   : > { %959 = vst [vmem:[%s422_s16 + $0x30] sm:$0xff] %v690_v3 }
  0xeb   : > { %960 = vst [vmem:[%s422_s16 + $0x38] sm:$0xff] %v691_v38 }
  0xec   : > { %1267 = shalt.err (!%p1264_p7)
}
  0xed   : > { %s1268_s30 = scalar_lea.hbm %s1796_s3, 1024  ;;  %s1272_s18 = scalar_lea.hbm %s1852_s7, 2048 }
  0xee   : > { %p1269_p9 = scmp.ne.s32.totalorder %s1796_s3, %s1268_s30  ;;  %p1273_p12 = scmp.lt.s32.totalorder %s1796_s3, %s1852_s7 }
  0xef   : > { %p1274_p4 = scmp.lt.s32.totalorder %s1272_s18, %s1268_s30 }
  0xf0   : > { %p1270_p11 = pnand %p1269_p9, %p1532_p2 }
  0xf1   : > { %p1275_p6 = por %p1274_p4, %p1273_p12 }
  0xf2   : > { %p1271_p10 = pneg %p1270_p11 }
  0xf4   : > { %p1276_p8 = pnand %p1275_p6, %p1271_p10 }
  0xf6   : > { %1279 = shalt.err (!%p1276_p8)
}
  0xf7   : > { %s1362_s11 = smov 128   ;;  %s1363_s6 = smov 8  }
  0xf8   : > { %993 = dma.vmem_to_hbm [thread:$0]  (%p1532_p2), %s1788_s19, 1024, %s1796_s3, %s696_s13, %s1362_s11, %s1362_s11, %s1363_s6  }
  0xf9 PF: > { %s726_s28 = sand.u32 1, %s1330_s24   ;;  %p1887_p13 = scmp.ge.s32.totalorder %s1350_s29, 2 }
  0xfa   : > { %s727_s14 = scalar_lea.sflag [#allocation4], %s726_s28 }
  0xfb   : > { %p1019_p0 = pnand %p1887_p13, %p1540_p3 }
  0xfd   : > { %p1020_p1 = pneg %p1019_p0 }
  0xff   : > { %1325 = dma.done.wait (%p1020_p1), %s727_s14, 1024  }
 0x100   : > { %1327 = vsyncadd (%p1020_p1), %s727_s14, 4294966272  ;;  %s29_s29 = sadd.s32 1, %s1350_s29   ;;  %s1888_s20 = sld [smem:[#allocation24_spill]] }
 0x101   : > { %p26_p5 = scmp.ge.s32.totalorder %s29_s29, 4   ;;  %s1889_s27 = sld [smem:[#allocation22_spill]] }
 0x102   : > { %s1890_s28 = sld [smem:[#allocation23_spill]]  ;;  %s1891_s24 = smov %s1334_s25 }
 0x103   : > { %s1892_s25 = smov %s1338_s26  ;;  %28 = sbr.rel (!%p26_p5) target bundleno = 18 (0x12), region = 136 }
 0x106   : > { %s1893_s26 = smov %s1888_s20 }
 0x108   :  { %732 = vsyncpa [#allocation3], 1 }
 0x109   :  { %734 = vsyncpa [#allocation3 + $0x1], 1 }
 0x10a   :  { %735 = vsyncpa [#allocation7], 1 }
 0x10b   :  { %737 = vsyncpa [#allocation7 + $0x1], 1 }
 0x10c   :  { %738 = vsyncpa [#allocation4], 1 }
 0x10d   :  { %740 = vsyncpa [#allocation4 + $0x1], 1 }
 0x10e   :  { %741 = vsyncpa [#allocation5], 1 }
 0x10f   :  { %743 = vsyncpa [#allocation5 + $0x1], 1 }
 0x110   :  { %744 = vsyncpa [#allocation10], 1 }
 0x111   :  { %745 = vsyncpa [#allocation13], 1 }

</bundles_post_ra>
